<compile_context>
chip_gen: v7x
topology: tpu7x:2x2x1
jax: 0.10.0
libtpu: 0.0.40
codegen_flags: <defaults>
</compile_context>

<pallas_src>
import jax
import jax.numpy as jnp
from jax.experimental import pallas as pl
from jax.experimental.pallas import tpu as pltpu


def _round_up(x, m):
    return ((x + m - 1) // m) * m


# ----------------------------------------------------------------------------------
# Tile selection (generation dependent).
# ----------------------------------------------------------------------------------
def _default_tiles():
    """Returns (tm_max, tn_default, tk_default, lane_align, ridge flop/byte)."""
    try:
        kind = jax.devices()[0].device_kind.lower()
    except Exception:
        kind = ""
    if any(v in kind for v in ("v2", "v3", "v4", "v5")):
        # <=v5e: 128x128 MXU, ridge ~240 flop/byte -> 512 tiles already compute-bound;
        # bigger tiles would only add VMEM pressure.
        return 512, 512, 512, 128, 240.0
    if "v7" in kind:
        # v7x: 2x256x256 MXU, 64 MiB VMEM, ridge ~310 flop/byte.
        return 1024, 1024, 1024, 256, 310.0
    # v6e (and default): 2x256x256 MXU, ridge ~680 flop/byte.
    return 1024, 1024, 1024, 256, 680.0


def _pick_tm(m, n, k, tm_max, ridge):
    """Pick tm from power-of-two candidates via a crude roofline proxy that balances
    M-padding waste against extra int8-weight re-reads from smaller M tiles."""
    if m <= 128:
        return _round_up(m, 16)          # single tile; keeps bf16 sublane packing
    best_t, best_cost = None, None
    t = tm_max
    while t >= 128:
        m_p = _round_up(m, t)
        # HBM bytes: int8 weight streamed once per M-tile + bf16 x + f32 out.
        hbm = (m_p // t) * n * k + m_p * k * 2 + m_p * n * 4
        cost = max(hbm * ridge, 2.0 * m_p * n * k)   # ~ time * peak_flops
        if best_cost is None or cost < best_cost:
            best_t, best_cost = t, cost
        t //= 2
    return best_t


def _tile_config(m, n, k):
    tm_d, tn_d, tk_d, align, ridge = _default_tiles()
    # tn/tk: biggest-that-fits, aligned to 256 on v6e/v7x (fills the 2x256x256 MXU),
    # 128 on <=v5e and for tiny feature dims.  tk multiples of 128 also satisfy the
    # int8 (32, 128) min-tile constraint.
    tn = min(tn_d, _round_up(n, align if n > 128 else 128))
    tk = min(tk_d, _round_up(k, align if k > 128 else 128))
    tm = _pick_tm(m, n, k, tm_d, ridge)
    return tm, tn, tk


# ----------------------------------------------------------------------------------
# Kernel 1: fused quantize + transpose prepack.
# Matches torch.quantize_per_tensor(zero_point=0, qint8): q = clamp(round(w/s), -128, 127);
# the dequant (* s) is folded into the matmul epilogue.
# ----------------------------------------------------------------------------------
def _quantize_kernel(scale_ref, w_ref, q_ref):
    # scale_ref : SMEM (1,) f32
    # w_ref     : VMEM (tn, tk) f32 block of the original (N, K) weight
    # q_ref     : VMEM (tk, tn) int8 -- transposed in-kernel so the matmul RHS is (K, N)
    inv = 1.0 / scale_ref[0]                                    # one scalar reciprocal per tile
    q = jnp.clip(jnp.round(w_ref[...] * inv), -128.0, 127.0)    # round-half-even, like torch
    q_ref[...] = jnp.transpose(q).astype(q_ref.dtype)           # exact integers in int8


def prepack_quantized_weight(weight, scale, *, tn, tk):
    """(N, K) f32 weight + (1,) f32 scale -> padded, transposed (K_p, N_p) int8 weight.

    Single HBM pass over the weight (read f32 once, write int8 once); the transpose is
    done in-kernel.  Cache and reuse the result across forwards when weight/scale are
    unchanged (see quant_linear_prepacked)."""
    n, k = weight.shape
    k_p = _round_up(k, tk)
    n_p = _round_up(n, tn)
    w_pad = jnp.pad(weight.astype(jnp.float32), ((0, n_p - n), (0, k_p - k)))

    return pl.pallas_call(
        _quantize_kernel,
        out_shape=jax.ShapeDtypeStruct((k_p, n_p), jnp.int8),
        grid=(k_p // tk, n_p // tn),
        in_specs=[
            pl.BlockSpec((1,), lambda i, j: (0,), memory_space=pltpu.SMEM),
            pl.BlockSpec((tn, tk), lambda i, j: (j, i)),   # read (N, K) blocks "transposed"
        ],
        out_specs=pl.BlockSpec((tk, tn), lambda i, j: (i, j)),
        compiler_params=pltpu.CompilerParams(
            dimension_semantics=("parallel", "parallel"),
        ),
    )(scale, w_pad)


# ----------------------------------------------------------------------------------
# Kernel 2: tiled matmul; f32 output block doubles as the K-resident accumulator.
# ----------------------------------------------------------------------------------
def _qmm_kernel(scale_ref, x_ref, q_ref, o_ref):
    # scale_ref : SMEM (1,) f32
    # x_ref     : VMEM (tm, tk) bf16
    # q_ref     : VMEM (tk, tn) int8  (already (K, N): no transpose in the kernel)
    # o_ref     : VMEM (tm, tn) f32   -- resident across the K grid axis (accumulator)
    k = pl.program_id(2)

    @pl.when(k == 0)
    def _():
        o_ref[...] = jnp.zeros_like(o_ref)

    o_ref[...] += jnp.dot(
        x_ref[...],
        q_ref[...].astype(jnp.bfloat16),     # int8 -> bf16 upcast hides under the MXU
        preferred_element_type=jnp.float32,
    )

    @pl.when(k == pl.num_programs(2) - 1)
    def _():
        # Per-tensor dequant scale: one multiply per output tile, not per weight element.
        o_ref[...] *= scale_ref[0]


def quant_linear_prepacked(x, q_kn, scale, out_features, *, tm, tn, tk):
    """out = scale * (x @ q_kn[:K, :N]) with q_kn the prepacked int8 (K_p, N_p) weight."""
    in_features = x.shape[-1]
    lead = x.shape[:-1]
    x2d = x.reshape(-1, in_features)
    m = x2d.shape[0]

    k_p, n_p = q_kn.shape
    assert k_p % tk == 0 and n_p % tn == 0
    m_p = _round_up(m, tm)

    # bf16 cast + zero pad (padding contributes zeros to the contraction).
    # TODO(synk): bf16 activations deviate slightly from a pure-f32 F.linear for very
    # large K; keep f32 activations if bit-closer parity with PyTorch is required.
    x_pad = jnp.pad(x2d.astype(jnp.bfloat16),
                    ((0, m_p - m), (0, k_p - in_features)))

    vmem_bytes = 2 * (tm * tk * 2 + tk * tn * 1) + 2 * tm * tn * 4   # dbl-buffered tiles
    cost = pl.CostEstimate(
        flops=int(2 * m_p * n_p * k_p),
        bytes_accessed=int(m_p * k_p * 2 + k_p * n_p * 1 + m_p * n_p * 4),
        transcendentals=0,
    )

    out_pad = pl.pallas_call(
        _qmm_kernel,
        out_shape=jax.ShapeDtypeStruct((m_p, n_p), jnp.float32),
        grid=(m_p // tm, n_p // tn, k_p // tk),
        in_specs=[
            pl.BlockSpec((1,), lambda i, j, k: (0,), memory_space=pltpu.SMEM),
            pl.BlockSpec((tm, tk), lambda i, j, k: (i, k)),
            pl.BlockSpec((tk, tn), lambda i, j, k: (k, j)),
        ],
        out_specs=pl.BlockSpec((tm, tn), lambda i, j, k: (i, j)),
        compiler_params=pltpu.CompilerParams(
            dimension_semantics=("parallel", "parallel", "arbitrary"),
            vmem_limit_bytes=int(min(64 * 2**20, max(32 * 2**20, 2 * vmem_bytes))),
        ),
        cost_estimate=cost,
    )(scale, x_pad, q_kn)

    return out_pad[:m, :out_features].reshape(*lead, out_features)


def quant_linear(x, weight, scale):
    """Forward of QuantLinear: F.linear(x, dequantize(quantize_per_tensor(weight, s, 0, qint8))).

    x: (..., in_features), weight: (out_features, in_features) f32, scale: (1,) f32.
    NOTE: re-packs the weight every call to mirror the PyTorch forward.  For repeated
    inference with a fixed weight, call prepack_quantized_weight() once and reuse
    quant_linear_prepacked() -- that removes all redundant weight HBM traffic.
    """
    in_features = x.shape[-1]
    out_features = weight.shape[0]
    m = 1
    for d in x.shape[:-1]:
        m *= d

    tm, tn, tk = _tile_config(m, out_features, in_features)
    q_kn = prepack_quantized_weight(weight, scale, tn=tn, tk=tk)
    return quant_linear_prepacked(x, q_kn, scale, out_features, tm=tm, tn=tn, tk=tk)


if __name__ == "__main__":
    key = jax.random.PRNGKey(0)
    k_x, k_w = jax.random.split(key)

    batch, seq, in_features, out_features = 2, 8, 32, 16

    x = jax.random.normal(k_x, (batch, seq, in_features), dtype=jnp.float32)
    weight = jax.random.normal(k_w, (out_features, in_features), dtype=jnp.float32)
    scale = jnp.ones((1,), dtype=jnp.float32)   # nn.Parameter(torch.ones(1))

    # Module-equivalent forward (prepack + matmul in one call).
    out = jax.block_until_ready(quant_linear(x, weight, scale))

    # Cached / prepacked path (what callers should use in a loop).
    m = batch * seq
    tm, tn, tk = _tile_config(m, out_features, in_features)
    q_kn = prepack_quantized_weight(weight, scale, tn=tn, tk=tk)
    out_pre = jax.block_until_ready(
        quant_linear_prepacked(x, q_kn, scale, out_features, tm=tm, tn=tn, tk=tk))

    # Reference in plain JAX (same quant/dequant semantics; x rounded to bf16 like the MXU operand).
    w_dq = jnp.clip(jnp.round(weight / scale[0]), -128.0, 127.0) * scale[0]
    x_bf = x.reshape(-1, in_features).astype(jnp.bfloat16).astype(jnp.float32)
    ref = (x_bf @ w_dq.T).reshape(batch, seq, out_features)

    assert out.shape == (batch, seq, out_features)
    assert jnp.allclose(out, ref, atol=1e-3, rtol=1e-3)
    assert jnp.allclose(out_pre, ref, atol=1e-3, rtol=1e-3)

    print("KERNEL_OK")
</pallas_src>

<mosaic_0001>
module attributes {stable_mosaic.version = 11 : i64} {
  func.func @_quantize_kernel(%arg0: i32, %arg1: i32, %arg2: memref<1xf32, #tpu.memory_space<smem>>, %arg3: memref<128x128xf32, #tpu.memory_space<vmem>>, %arg4: memref<128x128xi8, #tpu.memory_space<vmem>>) attributes {dimension_semantics = [#tpu.dimension_semantics<parallel>, #tpu.dimension_semantics<parallel>], iteration_bounds = array<i64: 1, 1>, scalar_prefetch = 0 : i64, scratch_operands = 0 : i64, tpu.core_type = #tpu.core_type<tc>, window_params = [{transform_indices = @transform_0, window_bounds = array<i64: 1>}, {transform_indices = @transform_1, window_bounds = array<i64: 128, 128>}, {transform_indices = @transform_2, window_bounds = array<i64: 128, 128>}]} {
    %c0 = arith.constant 0 : index
    %0 = memref.load %arg2[%c0] : memref<1xf32, #tpu.memory_space<smem>>
    %cst = arith.constant 1.000000e+00 : f32
    %1 = arith.divf %cst, %0 : f32
    %c0_0 = arith.constant 0 : index
    %c0_1 = arith.constant 0 : index
    %2 = vector.load %arg3[%c0_0, %c0_1] : memref<128x128xf32, #tpu.memory_space<vmem>>, vector<128x128xf32>
    %3 = vector.broadcast %1 : f32 to vector<128x128xf32>
    %4 = arith.mulf %2, %3 : vector<128x128xf32>
    %5 = math.roundeven %4 : vector<128x128xf32>
    %cst_2 = arith.constant -1.280000e+02 : f32
    %cst_3 = arith.constant 1.270000e+02 : f32
    %6 = vector.broadcast %cst_2 : f32 to vector<128x128xf32>
    %7 = arith.maximumf %6, %5 : vector<128x128xf32>
    %8 = vector.broadcast %cst_3 : f32 to vector<128x128xf32>
    %9 = arith.minimumf %8, %7 : vector<128x128xf32>
    %10 = tpu.transpose %9, [1, 0] : vector<128x128xf32> -> vector<128x128xf32>
    %11 = arith.fptosi %10 : vector<128x128xf32> to vector<128x128xi8>
    %c0_4 = arith.constant 0 : index
    %c0_5 = arith.constant 0 : index
    %12 = vector.load %arg4[%c0_4, %c0_5] : memref<128x128xi8, #tpu.memory_space<vmem>>, vector<128x128xi8>
    tpu.vector_store %arg4[%c0_4, %c0_5], %11 {strides = array<i32>} : memref<128x128xi8, #tpu.memory_space<vmem>>, vector<128x128xi8>,
    return
  }
  func.func @transform_0(%arg0: i32, %arg1: i32) -> i32 {
    %c0_i32 = arith.constant 0 : i32
    %c0_i32_0 = arith.constant 0 : i32
    return %c0_i32 : i32
  }
  func.func @transform_1(%arg0: i32, %arg1: i32) -> (i32, i32) {
    %c0_i32 = arith.constant 0 : i32
    return %arg1, %arg0 : i32, i32
  }
  func.func @transform_2(%arg0: i32, %arg1: i32) -> (i32, i32) {
    %c0_i32 = arith.constant 0 : i32
    return %arg0, %arg1 : i32, i32
  }
}

</mosaic_0001>

<bundles_post_ra>
// kernel: tpu_custom_call.1
= control target key start
LH: loop header
LB: loop body
LE: loop exit
PB: predicated region body
PF: predicated region fallthrough
CT: control target
= control target key end

     0   :  { %8 = vsyncpa [#allocation4], 0  ;;  %s363_s0 = inlined_call_operand.<no memory space> [shape: f32[1], index: 0, kind: input, shape index: {}]   ;;  %s364_s1 = inlined_call_operand.hbm [shape: f32[128,128], index: 1, kind: input, shape index: {}]   ;;  %s365_s2 = inlined_call_operand.hbm [shape: s8[128,128], index: 2, kind: output, shape index: {}]  }
   0x1   :  { %9 = vsyncpa [#allocation5], 0  ;;  %s293_s9 = smov [#allocation3]   ;;  %s245_s13 = scalar_lea.hbm %s364_s1, 2048 }
   0x2   :  { %s17_s10 = sshll.u32 %s293_s9, 4  ;;  %p246_p0 = scmp.ne.s32.totalorder %s364_s1, %s245_s13  ;;  %s18_s10 = int_to_ptr.vmem [resolvable:$true] %s17_s10 }
   0x3   :  { %p249_p1 = scmp.lt.u32.totalorder %s245_s13, %s364_s1 }
   0x5   :  { %p251_p2 = pnand %p249_p1, %p246_p0 }
   0x7   :  { %254 = shalt.err (!%p251_p2)
}
   0x8   :  { %s255_s18 = scalar_lea.vmem %s18_s10, 2048  ;;  %p260_p4 = scmp.lt.s32.totalorder %s18_s10, %s18_s10 }
   0x9   :  { %p256_p3 = scmp.ne.s32.totalorder %s18_s10, %s255_s18  ;;  %p261_p5 = scmp.lt.s32.totalorder %s255_s18, %s255_s18 }
   0xb   :  { %p262_p6 = por %p261_p5, %p260_p4 }
   0xd   :  { %p263_p7 = pnand %p262_p6, %p256_p3 }
   0xf   :  { %266 = shalt.err (!%p263_p7)
}
  0x10   :  { %s294_s19 = smov 128   ;;  %s295_s20 = smov 8   ;;  %v28_v0 = vstv %s363_s0 }
  0x11   :  { %23 = dma.hbm_to_vmem [thread:$0]  %s364_s1, 2048, %s18_s10, [#allocation4], %s294_s19, %s294_s19, %s295_s20  }
  0x12   :  { %289 = dma.done.wait [#allocation4], 2048  }
  0x13   :  { %290 = vsyncadd [#allocation4], 4294965248  ;;  %243 = vrcp.f32 %v28_v0  ;;  %v31_v2 = vld [vmem:[#allocation3] sm:$0xff]  ;;  %v32_v3 = vld [vmem:[#allocation3 + $0x8] sm:$0xff]  ;;  %s296_s0 = smov [#allocation6]  }
  0x14   :  { %v33_v5 = vld [vmem:[#allocation3 + $0x10] sm:$0xff]  ;;  %v34_v11 = vld [vmem:[#allocation3 + $0x18] sm:$0xff]  ;;  %v35_v17 = vld [vmem:[#allocation3 + $0x20] sm:$0xff]  ;;  %s209_s1 = sshll.u32 %s296_s0, 4  ;;  %s210_s1 = int_to_ptr.vmem [resolvable:$true] %s209_s1 }
  0x15   :  { %v36_v22 = vld [vmem:[#allocation3 + $0x28] sm:$0xff]  ;;  %v37_v27 = vld [vmem:[#allocation3 + $0x30] sm:$0xff]  ;;  %v38_v32 = vld [vmem:[#allocation3 + $0x38] sm:$0xff]  ;;  %s267_s26 = scalar_lea.vmem %s210_s1, 512  ;;  %p272_p9 = scmp.lt.s32.totalorder %s210_s1, %s210_s1 }
  0x16   :  { %v39_v37 = vld [vmem:[#allocation3 + $0x40] sm:$0xff]  ;;  %v40_v42 = vld [vmem:[#allocation3 + $0x48] sm:$0xff]  ;;  %v41_v47 = vld [vmem:[#allocation3 + $0x50] sm:$0xff]  ;;  %p268_p8 = scmp.ne.s32.totalorder %s210_s1, %s267_s26  ;;  %p273_p10 = scmp.lt.s32.totalorder %s267_s26, %s267_s26 }
  0x17   :  { %v42_v52 = vld [vmem:[#allocation3 + $0x58] sm:$0xff]  ;;  %v43_v57 = vld [vmem:[#allocation3 + $0x60] sm:$0xff]  ;;  %v44_v62 = vld [vmem:[#allocation3 + $0x68] sm:$0xff] }
  0x18   :  { %p274_p11 = por %p273_p10, %p272_p9 }
  0x1a   :  { %p275_p12 = pnand %p274_p11, %p268_p8 }
  0x1d   :  { %v244_v1 = vpop.eup %243 }
  0x1e   :  { %221 = vpush %v244_v1 }
  0x4f   :  { %s222_s25 = spop %221 }
  0x50   :  { %v330_v4 = vstv %s222_s25 }
  0x51   :  { %v48_v6 = vmul.f32 %v330_v4, %v31_v2  ;;  %v49_v7 = vmul.f32 %v330_v4, %v32_v3  ;;  %v50_v10 = vmul.f32 %v330_v4, %v33_v5  ;;  %v51_v16 = vmul.f32 %v330_v4, %v34_v11  ;;  %v45_v3 = vld [vmem:[#allocation3 + $0x70] sm:$0xff] }
  0x52   :  { %v52_v21 = vmul.f32 %v330_v4, %v35_v17  ;;  %v53_v26 = vmul.f32 %v330_v4, %v36_v22  ;;  %v54_v31 = vmul.f32 %v330_v4, %v37_v27  ;;  %v55_v36 = vmul.f32 %v330_v4, %v38_v32 }
  0x53   :  { %v223_v8 = vround.rtne.f32 %v48_v6  ;;  %v224_v9 = vround.rtne.f32 %v49_v7  ;;  %v225_v15 = vround.rtne.f32 %v50_v10  ;;  %v226_v20 = vround.rtne.f32 %v51_v16 }
  0x54   :  { %v227_v25 = vround.rtne.f32 %v52_v21  ;;  %v228_v30 = vround.rtne.f32 %v53_v26  ;;  %v229_v35 = vround.rtne.f32 %v54_v31  ;;  %v230_v40 = vround.rtne.f32 %v55_v36 }
  0x55   :  { %v80_v12 = vmax.f32 %v223_v8, -128.0  ;;  %v81_v14 = vmax.f32 %v224_v9, -128.0  ;;  %v82_v19 = vmax.f32 %v225_v15, -128.0  ;;  %v83_v24 = vmax.f32 %v226_v20, -128.0  ;;  %v46_v9 = vld [vmem:[#allocation3 + $0x78] sm:$0xff] }
  0x56   :  { %v84_v29 = vmax.f32 %v227_v25, -128.0  ;;  %v85_v34 = vmax.f32 %v228_v30, -128.0  ;;  %v86_v39 = vmax.f32 %v229_v35, -128.0  ;;  %v56_v41 = vmul.f32 %v330_v4, %v39_v37 }
  0x57   :  { %v96_v13 = vmin.f32 %v80_v12, 127.0  ;;  %v97_v18 = vmin.f32 %v81_v14, 127.0  ;;  %v98_v23 = vmin.f32 %v82_v19, 127.0  ;;  %v99_v28 = vmin.f32 %v83_v24, 127.0 }
  0x58   :  { %v100_v33 = vmin.f32 %v84_v29, 127.0  ;;  %v101_v38 = vmin.f32 %v85_v34, 127.0  ;;  %v102_v43 = vmin.f32 %v86_v39, 127.0  ;;  %v87_v44 = vmax.f32 %v230_v40, -128.0 }
  0x59   :  { %112 = vxpose.xlu0.b32.start [1/16] %v96_v13, 128  ;;  %v231_v45 = vround.rtne.f32 %v56_v41  ;;  %v57_v46 = vmul.f32 %v330_v4, %v40_v42  ;;  %v58_v51 = vmul.f32 %v330_v4, %v41_v47  ;;  %v59_v56 = vmul.f32 %v330_v4, %v42_v52 }
  0x5a   :  { %v103_v48 = vmin.f32 %v87_v44, 127.0  ;;  %v60_v61 = vmul.f32 %v330_v4, %v43_v57  ;;  %v61_v2 = vmul.f32 %v330_v4, %v44_v62  ;;  %v62_v8 = vmul.f32 %v330_v4, %v45_v3 }
  0x5b   :  { %v88_v49 = vmax.f32 %v231_v45, -128.0  ;;  %v232_v50 = vround.rtne.f32 %v57_v46  ;;  %v233_v55 = vround.rtne.f32 %v58_v51  ;;  %v234_v60 = vround.rtne.f32 %v59_v56 }
  0x5c   :  { %v235_v1 = vround.rtne.f32 %v60_v61  ;;  %v236_v7 = vround.rtne.f32 %v61_v2  ;;  %v237_v12 = vround.rtne.f32 %v62_v8  ;;  %v63_v13 = vmul.f32 %v330_v4, %v46_v9 }
  0x5d   :  { %113 = vxpose.xlu0.b32.cont [2/16] %v97_v18, 128  ;;  %v104_v53 = vmin.f32 %v88_v49, 127.0  ;;  %v89_v54 = vmax.f32 %v232_v50, -128.0  ;;  %v90_v59 = vmax.f32 %v233_v55, -128.0  ;;  %v91_v0 = vmax.f32 %v234_v60, -128.0 }
  0x5e   :  { %v92_v6 = vmax.f32 %v235_v1, -128.0  ;;  %v93_v11 = vmax.f32 %v236_v7, -128.0  ;;  %v94_v15 = vmax.f32 %v237_v12, -128.0  ;;  %v238_v16 = vround.rtne.f32 %v63_v13 }
  0x5f   :  { %v105_v58 = vmin.f32 %v89_v54, 127.0  ;;  %v106_v63 = vmin.f32 %v90_v59, 127.0  ;;  %v107_v5 = vmin.f32 %v91_v0, 127.0 }
  0x60   :  { %v108_v10 = vmin.f32 %v92_v6, 127.0  ;;  %v109_v14 = vmin.f32 %v93_v11, 127.0  ;;  %v110_v17 = vmin.f32 %v94_v15, 127.0  ;;  %v95_v18 = vmax.f32 %v238_v16, -128.0 }
  0x61   :  { %114 = vxpose.xlu0.b32.cont [3/16] %v98_v23, 128 }
  0x62   :  { %v111_v19 = vmin.f32 %v95_v18, 127.0 }
  0x65   :  { %115 = vxpose.xlu0.b32.cont [4/16] %v99_v28, 128 }
  0x69   :  { %116 = vxpose.xlu0.b32.cont [5/16] %v100_v33, 128 }
  0x6d   :  { %117 = vxpose.xlu0.b32.cont [6/16] %v101_v38, 128 }
  0x71   :  { %118 = vxpose.xlu0.b32.cont [7/16] %v102_v43, 128 }
  0x75   :  { %119 = vxpose.xlu0.b32.cont [8/16] %v103_v48, 128 }
  0x79   :  { %120 = vxpose.xlu0.b32.cont [9/16] %v104_v53, 128 }
  0x7d   :  { %121 = vxpose.xlu0.b32.cont [10/16] %v105_v58, 128 }
  0x81   :  { %122 = vxpose.xlu0.b32.cont [11/16] %v106_v63, 128 }
  0x85   :  { %123 = vxpose.xlu0.b32.cont [12/16] %v107_v5, 128 }
  0x89   :  { %124 = vxpose.xlu0.b32.cont [13/16] %v108_v10, 128 }
  0x8d   :  { %125 = vxpose.xlu0.b32.cont [14/16] %v109_v14, 128 }
  0x91   :  { %126 = vxpose.xlu0.b32.cont [15/16] %v110_v17, 128 }
  0x95   :  { %127 = vxpose.xlu0.b32.end [16/16] %v111_v19, 128 }
  0xd9   :  { %v128_v20 = vpop.trf.xlu0 }
  0xda   :  { %v144_v25 = vtrunc.f32 %v128_v20 }
  0xdd   :  { %v129_v21 = vpop.trf.xlu0 }
  0xde   :  { %v145_v23 = vtrunc.f32 %v129_v21 }
  0xe0   :  { %v160_v28 = vpack.c.f32.eXmY %v144_v25, %v145_v23, 312 }
  0xe1   :  { %v130_v22 = vpop.trf.xlu0 }
  0xe2   :  { %v146_v26 = vtrunc.f32 %v130_v22 }
  0xe5   :  { %v131_v24 = vpop.trf.xlu0 }
  0xe6   :  { %v147_v27 = vtrunc.f32 %v131_v24 }
  0xe8   :  { %v164_v4 = vpack.c.f32.eXmY %v146_v26, %v147_v27, 312 }
  0xe9   :  { %v132_v29 = vpop.trf.xlu0 }
  0xea   :  { %v168_v30 = vpack.c.b8 %v164_v4, %v160_v28  ;;  %v148_v35 = vtrunc.f32 %v132_v29 }
  0xec   :  { %200 = vst [vmem:[#allocation6] sm:$0xff] %v168_v30 }
  0xed   :  { %v133_v31 = vpop.trf.xlu0 }
  0xee   :  { %v149_v33 = vtrunc.f32 %v133_v31 }
  0xf0   :  { %v170_v38 = vpack.c.f32.eXmY %v148_v35, %v149_v33, 312 }
  0xf1   :  { %v134_v32 = vpop.trf.xlu0 }
  0xf2   :  { %v150_v36 = vtrunc.f32 %v134_v32 }
  0xf5   :  { %v135_v34 = vpop.trf.xlu0 }
  0xf6   :  { %v151_v37 = vtrunc.f32 %v135_v34 }
  0xf8   :  { %v174_v39 = vpack.c.f32.eXmY %v150_v36, %v151_v37, 312 }
  0xf9   :  { %v136_v40 = vpop.trf.xlu0 }
  0xfa   :  { %v178_v41 = vpack.c.b8 %v174_v39, %v170_v38  ;;  %v152_v46 = vtrunc.f32 %v136_v40 }
  0xfc   :  { %201 = vst [vmem:[#allocation6 + $0x8] sm:$0xff] %v178_v41 }
  0xfd   :  { %v137_v42 = vpop.trf.xlu0 }
  0xfe   :  { %v153_v44 = vtrunc.f32 %v137_v42 }
 0x100   :  { %v180_v49 = vpack.c.f32.eXmY %v152_v46, %v153_v44, 312 }
 0x101   :  { %v138_v43 = vpop.trf.xlu0 }
 0x102   :  { %v154_v47 = vtrunc.f32 %v138_v43 }
 0x105   :  { %v139_v45 = vpop.trf.xlu0 }
 0x106   :  { %v155_v48 = vtrunc.f32 %v139_v45 }
 0x108   :  { %v184_v50 = vpack.c.f32.eXmY %v154_v47, %v155_v48, 312 }
 0x109   :  { %v140_v51 = vpop.trf.xlu0 }
 0x10a   :  { %v188_v52 = vpack.c.b8 %v184_v50, %v180_v49  ;;  %v156_v57 = vtrunc.f32 %v140_v51 }
 0x10c   :  { %202 = vst [vmem:[#allocation6 + $0x10] sm:$0xff] %v188_v52 }
 0x10d   :  { %v141_v53 = vpop.trf.xlu0 }
 0x10e   :  { %v157_v55 = vtrunc.f32 %v141_v53 }
 0x110   :  { %v190_v60 = vpack.c.f32.eXmY %v156_v57, %v157_v55, 312 }
 0x111   :  { %v142_v54 = vpop.trf.xlu0 }
 0x112   :  { %v158_v58 = vtrunc.f32 %v142_v54 }
 0x115   :  { %v143_v56 = vpop.trf.xlu0 }
 0x116   :  { %v159_v59 = vtrunc.f32 %v143_v56 }
 0x118   :  { %v194_v61 = vpack.c.f32.eXmY %v158_v58, %v159_v59, 312 }
 0x11a   :  { %v198_v62 = vpack.c.b8 %v194_v61, %v190_v60 }
 0x11c   :  { %203 = vst [vmem:[#allocation6 + $0x18] sm:$0xff] %v198_v62 }
 0x11d   :  { %278 = shalt.err (!%p275_p12)
}
 0x11e   :  { %s279_s29 = scalar_lea.hbm %s365_s2, 512 }
 0x11f   :  { %p280_p13 = scmp.ne.s32.totalorder %s365_s2, %s279_s29  ;;  %p283_p0 = scmp.lt.u32.totalorder %s279_s29, %s365_s2 }
 0x121   :  { %p285_p1 = pnand %p283_p0, %p280_p13 }
 0x123   :  { %288 = shalt.err (!%p285_p1)
}
 0x124   :  { %215 = dma.vmem_to_hbm [thread:$0]  %s210_s1, 512, %s365_s2, [#allocation5], %s294_s19, %s294_s19, %s295_s20  }
 0x125   :  { %291 = dma.done.wait [#allocation5], 512  }
 0x126   :  { %292 = vsyncadd [#allocation5], 4294966784 }
 0x127   :  { %219 = vsyncpa [#allocation4], 1 }
 0x128   :  { %220 = vsyncpa [#allocation5], 1 }

</bundles_post_ra>
